<compile_context>
chip_gen: v7x
topology: tpu7x:2x2x1
jax: 0.10.0
libtpu: 0.0.40
codegen_flags: <defaults>
</compile_context>

<pallas_src>
import jax
import jax.numpy as jnp
from jax.experimental import pallas as pl
from jax.experimental.pallas import tpu as pltpu

_D = 4              # feature dim of the torch.nn.Linear(4, 4)
_PACK = 32          # original rows packed per 128-lane packed row
_LANES = _PACK * _D  # 128


def _round_up(v, m):
    return (v + m - 1) // m * m


def mymodule_kernel(x_ref, w_ref, b_ref, o_ref):
    # x_ref: (TM, 128) packed batch tile (32 original rows of 4 features each)
    # w_ref: (128, 128) block-diagonal fused weight = kron(eye(32), (W1+W2)^T)
    # b_ref: (1, 128)   fused bias tiled 32x
    x = x_ref[...]
    y = jnp.dot(x, w_ref[...], preferred_element_type=jnp.float32)  # MXU
    o_ref[...] = (2.0 * jnp.maximum(x, 0.0) + y + b_ref[...]).astype(o_ref.dtype)


def prepare_params(w1, b1, w2, b2):
    """Parameter prep — compute once per module, hoisted out of the hot path."""
    w_sum = (w1 + w2).T.astype(jnp.float32)                        # (in, out) = (4, 4)
    b_sum = (b1 + b2).astype(jnp.float32)                          # (4,)
    w_blk = jnp.kron(jnp.eye(_PACK, dtype=jnp.float32), w_sum)     # (128, 128), 64 KiB
    b_tile = jnp.tile(b_sum, _PACK).reshape(1, _LANES)             # (1, 128)
    return w_blk, b_tile


def mymodule_forward(x, w_blk, b_tile):
    """x: (N, 4) f32; w_blk/b_tile from prepare_params()."""
    n, d = x.shape
    assert d == _D

    # Lane-dense repack: (N, 4) -> (N_pad/32, 128). Contiguous reshape, no data
    # movement beyond the (rare) zero-pad of the tail rows.
    n_pad = _round_up(n, _PACK)
    if n_pad != n:
        x = jnp.pad(x, ((0, n_pad - n), (0, 0)))
    n_packed = n_pad // _PACK
    xp = x.reshape(n_packed, _LANES)

    # Row-tile selection: big tiles (up to 4096 packed rows = 2 MiB per f32
    # buffer) to amortize the ~0.35us per-grid-step cost, but keep >= 4 grid
    # steps for large N so both v7x TensorCores get sharded work.
    if n_packed <= 512:
        tm = n_packed                     # single full block (covers small N)
    else:
        tm = min(4096, _round_up(pl.cdiv(n_packed, 4), 8))
    grid = (pl.cdiv(n_packed, tm),)

    out_p = pl.pallas_call(
        mymodule_kernel,
        out_shape=jax.ShapeDtypeStruct((n_packed, _LANES), jnp.float32),
        grid=grid,
        in_specs=[
            pl.BlockSpec((tm, _LANES), lambda i: (i, 0)),       # x, batch-tiled
            pl.BlockSpec((_LANES, _LANES), lambda i: (0, 0)),   # W_blk (resident)
            pl.BlockSpec((1, _LANES), lambda i: (0, 0)),        # bias (resident)
        ],
        out_specs=pl.BlockSpec((tm, _LANES), lambda i: (i, 0)),
        compiler_params=pltpu.CompilerParams(
            dimension_semantics=("parallel",),    # shard batch across v7x 2xTC
            vmem_limit_bytes=32 * 1024 * 1024,    # 2-in + 2-out bufs + 64 KiB W
        ),
    )(xp, w_blk, b_tile)

    # Unpack back to the PyTorch (N, 4) convention; drop pad rows.
    return out_p.reshape(n_pad, _D)[:n]


def reference_forward(x, w1, b1, w2, b2):
    y1 = x @ w1.T + b1
    y2 = x @ w2.T + b2
    r = jnp.maximum(x, 0.0)
    return y1 + y2 + r + r


if __name__ == "__main__":
    key = jax.random.PRNGKey(0)
    kx, k1, kb1, k2, kb2 = jax.random.split(key, 5)

    N, D = 8, 4  # batch=8, features=4 (torch.nn.Linear(4, 4))
    x = jax.random.normal(kx, (N, D), dtype=jnp.float32)

    # Deterministic parameter init mimicking nn.Linear's U(-1/sqrt(in), 1/sqrt(in)).
    bound = 1.0 / jnp.sqrt(jnp.float32(D))
    w1 = jax.random.uniform(k1, (D, D), jnp.float32, -bound, bound)
    b1 = jax.random.uniform(kb1, (D,), jnp.float32, -bound, bound)
    w2 = jax.random.uniform(k2, (D, D), jnp.float32, -bound, bound)
    b2 = jax.random.uniform(kb2, (D,), jnp.float32, -bound, bound)

    # Hoisted, one-time parameter prep; jit the forward so pad/reshape fuse
    # with the pallas_call dispatch.
    w_blk, b_tile = prepare_params(w1, b1, w2, b2)
    fwd = jax.jit(mymodule_forward)

    out = fwd(x, w_blk, b_tile)
    out = jax.block_until_ready(out)

    ref = reference_forward(x, w1, b1, w2, b2)
    assert out.shape == (N, D)
    assert jnp.allclose(out, ref, atol=1e-5, rtol=1e-5), "mismatch vs reference"

    print("KERNEL_OK")
</pallas_src>

<mosaic_0001>
module attributes {stable_mosaic.version = 11 : i64} {
  func.func @mymodule_kernel(%arg0: i32, %arg1: memref<1x128xf32, #tpu.memory_space<vmem>>, %arg2: memref<128x128xf32, #tpu.memory_space<vmem>>, %arg3: memref<1x128xf32, #tpu.memory_space<vmem>>, %arg4: memref<1x128xf32, #tpu.memory_space<vmem>>) attributes {dimension_semantics = [#tpu.dimension_semantics<parallel>], iteration_bounds = array<i64: 1>, scalar_prefetch = 0 : i64, scratch_operands = 0 : i64, tpu.core_type = #tpu.core_type<tc>, window_params = [{transform_indices = @transform_0, window_bounds = array<i64: 1, 128>}, {pipeline_mode = #tpu.pipeline_mode<synchronous>, transform_indices = @transform_1, window_bounds = array<i64: 128, 128>}, {pipeline_mode = #tpu.pipeline_mode<synchronous>, transform_indices = @transform_2, window_bounds = array<i64: 1, 128>}, {transform_indices = @transform_3, window_bounds = array<i64: 1, 128>}]} {
    %c0 = arith.constant 0 : index
    %c0_0 = arith.constant 0 : index
    %0 = vector.load %arg1[%c0, %c0_0] : memref<1x128xf32, #tpu.memory_space<vmem>>, vector<1x128xf32>
    %c0_1 = arith.constant 0 : index
    %c0_2 = arith.constant 0 : index
    %1 = vector.load %arg2[%c0_1, %c0_2] : memref<128x128xf32, #tpu.memory_space<vmem>>, vector<128x128xf32>
    %cst = arith.constant dense<0.000000e+00> : vector<1x128xf32>
    %2 = tpu.matmul %0, %1, %cst {dimension_numbers = #tpu.dot_dimension_numbers<[1], [0], [0], [1], [0, 0, 1, 1], [], []>} : vector<1x128xf32>, vector<128x128xf32>, vector<1x128xf32> -> vector<1x128xf32>
    %cst_3 = arith.constant 0.000000e+00 : f32
    %3 = vector.broadcast %cst_3 : f32 to vector<1x128xf32>
    %4 = arith.maximumf %0, %3 : vector<1x128xf32>
    %cst_4 = arith.constant 2.000000e+00 : f32
    %5 = vector.broadcast %cst_4 : f32 to vector<1x128xf32>
    %6 = arith.mulf %5, %4 : vector<1x128xf32>
    %7 = arith.addf %6, %2 : vector<1x128xf32>
    %c0_5 = arith.constant 0 : index
    %c0_6 = arith.constant 0 : index
    %8 = vector.load %arg3[%c0_5, %c0_6] : memref<1x128xf32, #tpu.memory_space<vmem>>, vector<1x128xf32>
    %9 = arith.addf %7, %8 : vector<1x128xf32>
    %c0_7 = arith.constant 0 : index
    %c0_8 = arith.constant 0 : index
    %10 = vector.load %arg4[%c0_7, %c0_8] : memref<1x128xf32, #tpu.memory_space<vmem>>, vector<1x128xf32>
    tpu.vector_store %arg4[%c0_7, %c0_8], %9 {strides = array<i32>} : memref<1x128xf32, #tpu.memory_space<vmem>>, vector<1x128xf32>,
    return
  }
  func.func @transform_0(%arg0: i32) -> (i32, i32) {
    %c0_i32 = arith.constant 0 : i32
    %c0_i32_0 = arith.constant 0 : i32
    return %arg0, %c0_i32 : i32, i32
  }
  func.func @transform_1(%arg0: i32) -> (i32, i32) {
    %c0_i32 = arith.constant 0 : i32
    %c0_i32_0 = arith.constant 0 : i32
    %c0_i32_1 = arith.constant 0 : i32
    return %c0_i32, %c0_i32_0 : i32, i32
  }
  func.func @transform_2(%arg0: i32) -> (i32, i32) {
    %c0_i32 = arith.constant 0 : i32
    %c0_i32_0 = arith.constant 0 : i32
    %c0_i32_1 = arith.constant 0 : i32
    return %c0_i32, %c0_i32_0 : i32, i32
  }
  func.func @transform_3(%arg0: i32) -> (i32, i32) {
    %c0_i32 = arith.constant 0 : i32
    %c0_i32_0 = arith.constant 0 : i32
    return %arg0, %c0_i32 : i32, i32
  }
}

</mosaic_0001>

<bundles_post_ra>
// kernel: mymodule_forward.1
= control target key start
LH: loop header
LB: loop body
LE: loop exit
PB: predicated region body
PF: predicated region fallthrough
CT: control target
= control target key end

     0   :  { %8 = vsyncpa [#allocation3], 0  ;;  %s232_s12 = smov [#allocation2]   ;;  %s279_s0 = inlined_call_operand.vmem [shape: f32[1,128], index: 0, kind: input, shape index: {}]   ;;  %s280_s1 = inlined_call_operand.hbm [shape: f32[128,128], index: 1, kind: input, shape index: {}]   ;;  %s281_s2 = inlined_call_operand.vmem [shape: f32[1,128], index: 2, kind: input, shape index: {}]   ;;  %s282_s3 = inlined_call_operand.vmem [shape: f32[1,128], index: 3, kind: output, shape index: {}]  }
   0x1   :  { %s16_s13 = sshll.u32 %s232_s12, 4  ;;  %s208_s16 = scalar_lea.hbm %s280_s1, 2048  ;;  %s17_s13 = int_to_ptr.vmem [resolvable:$true] %s16_s13 }
   0x2   :  { %p209_p0 = scmp.ne.s32.totalorder %s280_s1, %s208_s16  ;;  %p212_p1 = scmp.lt.u32.totalorder %s208_s16, %s280_s1 }
   0x4   :  { %p214_p2 = pnand %p212_p1, %p209_p0 }
   0x6   :  { %217 = shalt.err (!%p214_p2)
}
   0x7   :  { %s218_s21 = scalar_lea.vmem %s17_s13, 2048  ;;  %p223_p4 = scmp.lt.s32.totalorder %s17_s13, %s17_s13 }
   0x8   :  { %p219_p3 = scmp.ne.s32.totalorder %s17_s13, %s218_s21  ;;  %p224_p5 = scmp.lt.s32.totalorder %s218_s21, %s218_s21 }
   0xa   :  { %p225_p6 = por %p224_p5, %p223_p4 }
   0xc   :  { %p226_p7 = pnand %p225_p6, %p219_p3 }
   0xe   :  { %229 = shalt.err (!%p226_p7)
}
   0xf   :  { %s233_s22 = smov 128   ;;  %s234_s23 = smov 8  }
  0x10   :  { %22 = dma.hbm_to_vmem [thread:$0]  %s280_s1, 2048, %s17_s13, [#allocation3], %s233_s22, %s233_s22, %s234_s23  }
  0x11   :  { %230 = dma.done.wait [#allocation3], 2048  }
  0x12   :  { %231 = vsyncadd [#allocation3], 4294965248  ;;  %v235_v0 = vmov 0.0|0.0   ;;  %vm236_vm0 = vmmov 0   ;;  %v237_v1 = vmov 0.0   ;;  %v29_v2 = vld [vmem:[#allocation2] sm:$0xff] }
  0x13   :  { %178 = vmatprep.subr.bf16.mxu0 %v235_v0  ;;  %175 = vmatprep.mubr.msk.f32.mxu0 %vm236_vm0, %v237_v1  ;;  %v30_v3 = vld [vmem:[#allocation2 + $0x8] sm:$0xff]  ;;  %v31_v4 = vld [vmem:[#allocation2 + $0x10] sm:$0xff]  ;;  %v32_v6 = vld [vmem:[#allocation2 + $0x18] sm:$0xff] }
  0x14   :  { %v179_v5 = vpack.c.bf16 %v30_v3, %v29_v2  ;;  %v182_v7 = vpack.c.bf16 %v32_v6, %v31_v4  ;;  %v33_v8 = vld [vmem:[#allocation2 + $0x20] sm:$0xff]  ;;  %v34_v9 = vld [vmem:[#allocation2 + $0x28] sm:$0xff]  ;;  %v35_v11 = vld [vmem:[#allocation2 + $0x30] sm:$0xff] }
  0x15   :  { %v185_v10 = vpack.c.bf16 %v34_v9, %v33_v8  ;;  %v36_v12 = vld [vmem:[#allocation2 + $0x38] sm:$0xff]  ;;  %v37_v14 = vld [vmem:[#allocation2 + $0x40] sm:$0xff]  ;;  %v38_v15 = vld [vmem:[#allocation2 + $0x48] sm:$0xff] }
  0x16   :  { %180 = vmatpush3.bf16.msra.mxu0 %v179_v5  ;;  %v188_v13 = vpack.c.bf16 %v36_v12, %v35_v11  ;;  %v191_v16 = vpack.c.bf16 %v38_v15, %v37_v14  ;;  %v39_v17 = vld [vmem:[#allocation2 + $0x50] sm:$0xff]  ;;  %v40_v18 = vld [vmem:[#allocation2 + $0x58] sm:$0xff]  ;;  %v41_v20 = vld [vmem:[#allocation2 + $0x60] sm:$0xff] }
  0x17   :  { %181 = vmatprep.subr.bf16.mxu0 %v235_v0  ;;  %v194_v19 = vpack.c.bf16 %v40_v18, %v39_v17  ;;  %v42_v21 = vld [vmem:[#allocation2 + $0x68] sm:$0xff]  ;;  %v43_v23 = vld [vmem:[#allocation2 + $0x70] sm:$0xff]  ;;  %v44_v24 = vld [vmem:[#allocation2 + $0x78] sm:$0xff] }
  0x18   :  { %v197_v22 = vpack.c.bf16 %v42_v21, %v41_v20  ;;  %v200_v25 = vpack.c.bf16 %v44_v24, %v43_v23  ;;  %v28_v26 = vld [vmem:[%s279_s0] sm:$0x1] }
  0x19   :  { %v115_v27 = vmax.f32 %v28_v26, 0.0  ;;  %v118_v30 = vld [vmem:[%s281_s2] sm:$0x1] }
  0x1a   :  { %183 = vmatpush3.bf16.msra.mxu0 %v182_v7 }
  0x1b   :  { %184 = vmatprep.subr.bf16.mxu0 %v235_v0  ;;  %v116_v28 = vmul.f32 2.0, %v115_v27 }
  0x1e   :  { %186 = vmatpush3.bf16.msra.mxu0 %v185_v10 }
  0x1f   :  { %187 = vmatprep.subr.bf16.mxu0 %v235_v0 }
  0x22   :  { %189 = vmatpush3.bf16.msra.mxu0 %v188_v13 }
  0x23   :  { %190 = vmatprep.subr.bf16.mxu0 %v235_v0 }
  0x26   :  { %192 = vmatpush3.bf16.msra.mxu0 %v191_v16 }
  0x27   :  { %193 = vmatprep.subr.bf16.mxu0 %v235_v0 }
  0x2a   :  { %195 = vmatpush3.bf16.msra.mxu0 %v194_v19 }
  0x2b   :  { %196 = vmatprep.subr.bf16.mxu0 %v235_v0 }
  0x2e   :  { %198 = vmatpush3.bf16.msra.mxu0 %v197_v22 }
  0x2f   :  { %199 = vmatprep.subr.bf16.mxu0 %v235_v0 }
  0x32   :  { %201 = vmatpush3.bf16.msra.mxu0 %v200_v25 }
  0x35   :  { %176 = vmatmul.mubr.f32.vlgmr.msra.gmra.mrb[0].mxu0 %v28_v26 }
 0x108   :  { %v111_v29 = vpop.f32.mrb[0].mxu0 }
 0x109   :  { %v117_v31 = vadd.f32 %v116_v28, %v111_v29  ;;  %v177_v32 = vpop.f32.mrb[1].mxu0 }
 0x10b   :  { %v119_v33 = vadd.f32 %v118_v30, %v117_v31 }
 0x10d   :  { %120 = vst [vmem:[%s282_s3] sm:$0x1] %v119_v33 }
 0x10e   :  { %125 = vsyncpa [#allocation3], 1 }

</bundles_post_ra>
